<compile_context>
chip_gen: v5e
topology: v5e:2x2
jax: 0.10.0
libtpu: 0.0.40
codegen_flags: <defaults>
</compile_context>

<pallas_src>
import functools

import jax
import jax.numpy as jnp
import numpy as np
from jax.experimental import pallas as pl
from jax.experimental.pallas import tpu as pltpu


def _iou_partial_kernel(p_ref, c_ref, out_ref, *, compute_dtype):
    # p_ref: [T, Ap, 8]  packed patch detections: (x1, y1, x2, y2, cls|-1, area_a, 0, 0)
    # c_ref: [T, 8, Bp]  packed clean detections (transposed):
    #                    (x1, y1, x2, y2, cls, val, area_b, 0)
    cdt = compute_dtype

    # Slice fields straight off the refs; patch fields are [T, A, 1] (one lane
    # broadcast each), clean fields are [T, 1, Bp] (lane dense).
    ax1 = p_ref[:, :, 0:1].astype(cdt)
    ay1 = p_ref[:, :, 1:2].astype(cdt)
    ax2 = p_ref[:, :, 2:3].astype(cdt)
    ay2 = p_ref[:, :, 3:4].astype(cdt)
    pcls = p_ref[:, :, 4:5]                      # f32; -1 encodes "invalid"
    area_a = p_ref[:, :, 5:6].astype(cdt)

    bx1 = c_ref[:, 0:1, :].astype(cdt)
    by1 = c_ref[:, 1:2, :].astype(cdt)
    bx2 = c_ref[:, 2:3, :].astype(cdt)
    by2 = c_ref[:, 3:4, :].astype(cdt)
    ccls = c_ref[:, 4:5, :]                      # f32
    cval = c_ref[:, 5:6, :]                      # f32
    area_b = c_ref[:, 6:7, :].astype(cdt)

    # intersect()
    iw = jnp.maximum(jnp.minimum(ax2, bx2) - jnp.maximum(ax1, bx1), 0.0)
    ih = jnp.maximum(jnp.minimum(ay2, by2) - jnp.maximum(ay1, by1), 0.0)
    inter = iw * ih                              # [T, A, Bp]

    # get_iou(): divide routed to the EUP via approximate reciprocal; epsilon
    # guard kills the 0/0 NaN for degenerate / padded boxes.
    union = area_a + area_b - inter
    inv = pl.reciprocal(jnp.maximum(union.astype(jnp.float32), 1e-12),
                        approx=True)
    iou = inter.astype(jnp.float32) * inv        # [T, A, Bp], f32

    # class filter; patch validity is pre-folded into pcls (= -1 if invalid).
    masked = jnp.where(pcls == ccls, iou, 0.0)
    # target.max(dim=0) per clean detection (0.0 if no matching patch boxes)
    target_m = jnp.max(masked, axis=1, keepdims=True)            # [T, 1, Bp]

    # Lane-dense per-tile partial sums of valid clean-box IoU maxima; the tiny
    # cross-lane reduction happens in the wrapper as an XLA op.
    out_ref[...] = jnp.sum(target_m * cval, axis=0, keepdims=True)  # [1, 1, Bp]


def _decode(pred, conf_thres):
    """xywh->xyxy + confidence masking (fixed-shape stand-in for NMS candidate
    selection).  pred: [N, P, 5+nc] = (cx, cy, w, h, obj, cls_0..cls_{nc-1})."""
    # TODO(synk): full torchvision-style NMS IoU suppression is data-dependent
    #             (variable-length outputs) and is not reproduced here.
    xy = pred[..., 0:2]
    wh = pred[..., 2:4]
    boxes = jnp.concatenate([xy - wh * 0.5, xy + wh * 0.5], axis=-1)     # [N,P,4]
    obj = pred[..., 4:5]
    scores = pred[..., 5:] * obj
    conf = jnp.max(scores, axis=-1)
    cls = jnp.argmax(scores, axis=-1).astype(jnp.float32)
    valid = ((conf > conf_thres) & (pred[..., 4] > conf_thres)).astype(jnp.float32)
    return boxes.astype(jnp.float32), cls, valid


def _round_up(x, m):
    return (x + m - 1) // m * m


def iou_loss(output_clean, output_patch, conf_threshold, iou_threshold, img_size,
             img_tile=16, compute_dtype=jnp.float32):
    del iou_threshold  # only used by the (untranslated) NMS suppression step
    del img_size       # gn division is a mathematical no-op for IoU
    patch_conf = 0.001  # as in the torch reference
    # TODO(synk): fuse xywh->xyxy decode + packing into a Pallas prologue to cut
    #             the wrapper's extra HBM passes at real detector sizes.
    pbox, pcls, pval = _decode(output_patch, patch_conf)
    cbox, ccls, cval = _decode(output_clean, conf_threshold)

    n_img, A, _ = pbox.shape
    B = cbox.shape[1]

    # Lane-dense / sublane-aligned padding.
    Ap = _round_up(A, 8)
    Bp = _round_up(B, 128)

    # Image tile: big enough to amortise the ~600-cycle grid-step overhead, but
    # capped so the "parallel" batch grid keeps >= 2 steps (v7x has 2 TCs; a
    # single-step grid would leave one idle).
    T = max(1, min(img_tile, n_img))
    if n_img >= 2:
        T = min(T, -(-n_img // 2))
    Np = _round_up(n_img, T)
    n_tiles = Np // T

    # Patch side packed as [Np, Ap, 8] = (x1, y1, x2, y2, cls|-1, area_a, 0, 0).
    # Validity is folded into the class field: invalid boxes never match.
    p_area = (pbox[..., 2] - pbox[..., 0]) * (pbox[..., 3] - pbox[..., 1])
    p_cls = jnp.where(pval > 0.5, pcls, -1.0)
    zeros_p = jnp.zeros_like(p_area)
    patch = jnp.stack(
        [pbox[..., 0], pbox[..., 1], pbox[..., 2], pbox[..., 3],
         p_cls, p_area, zeros_p, zeros_p], axis=-1)              # [N, A, 8]
    patch = jnp.pad(patch, ((0, Np - n_img), (0, Ap - A), (0, 0)))
    # padded patch rows are zero boxes -> intersection (and hence IoU) is 0.

    # Clean side packed & transposed as [Np, 8, Bp] (fields on the sublane).
    c_area = (cbox[..., 2] - cbox[..., 0]) * (cbox[..., 3] - cbox[..., 1])
    zeros_c = jnp.zeros_like(c_area)
    clean = jnp.stack(
        [cbox[..., 0], cbox[..., 1], cbox[..., 2], cbox[..., 3],
         ccls, cval, c_area, zeros_c], axis=-1)                  # [N, B, 8]
    clean = jnp.swapaxes(clean, 1, 2)                            # [N, 8, B]
    clean = jnp.pad(clean, ((0, Np - n_img), (0, 0), (0, Bp - B)))
    # padded clean columns have val = 0 -> excluded from the sum.

    # Explicit VMEM budget: double-buffered blocks + elementwise temps.
    itemsize = max(int(jnp.dtype(compute_dtype).itemsize), 4)
    live = (2 * T * Ap * 8 * 4 + 2 * T * 8 * Bp * 4 + 2 * Bp * 4
            + 8 * T * Ap * Bp * itemsize)
    vmem_limit = int(min(max(4 * live, 16 * 2**20), 100 * 2**20))

    cost = pl.CostEstimate(
        flops=20 * Np * Ap * Bp,
        transcendentals=Np * Ap * Bp,
        bytes_accessed=Np * Ap * 8 * 4 + Np * 8 * Bp * 4 + n_tiles * Bp * 4)

    partial = pl.pallas_call(
        functools.partial(_iou_partial_kernel, compute_dtype=compute_dtype),
        out_shape=jax.ShapeDtypeStruct((n_tiles, 1, Bp), jnp.float32),
        grid=(n_tiles,),
        in_specs=[
            pl.BlockSpec((T, Ap, 8), lambda i: (i, 0, 0)),       # packed patch
            pl.BlockSpec((T, 8, Bp), lambda i: (i, 0, 0)),       # packed clean^T
        ],
        out_specs=pl.BlockSpec((1, 1, Bp), lambda i: (i, 0, 0)),
        compiler_params=pltpu.CompilerParams(
            dimension_semantics=("parallel",),
            vmem_limit_bytes=vmem_limit),
        cost_estimate=cost,
    )(patch, clean)

    total = jnp.sum(partial)
    count = jnp.sum(cval)  # number of valid clean detections (kernel-independent)
    # len(batch_loss) == 0  ->  return 1.0 ; else 1 - mean(batch_loss)
    return jnp.where(count > 0.0, 1.0 - total / jnp.maximum(count, 1.0), 1.0)


def _reference_loss(output_clean, output_patch, conf_threshold, img_size):
    """Pure numpy reference with identical semantics (for verification).
    Keeps the gn normalisation of the torch reference (IoU-invariant)."""
    pbox, pcls, pval = map(np.asarray, _decode(output_patch, 0.001))
    cbox, ccls, cval = map(np.asarray, _decode(output_clean, conf_threshold))
    h, w = img_size
    gn = np.array([w, h, w, h], np.float32)
    total, count = 0.0, 0.0
    for n in range(pbox.shape[0]):
        a = pbox[n] / gn
        b = cbox[n] / gn
        iw = np.maximum(np.minimum(a[:, None, 2], b[None, :, 2]) -
                        np.maximum(a[:, None, 0], b[None, :, 0]), 0.0)
        ih = np.maximum(np.minimum(a[:, None, 3], b[None, :, 3]) -
                        np.maximum(a[:, None, 1], b[None, :, 1]), 0.0)
        inter = iw * ih
        area_a = ((a[:, 2] - a[:, 0]) * (a[:, 3] - a[:, 1]))[:, None]
        area_b = ((b[:, 2] - b[:, 0]) * (b[:, 3] - b[:, 1]))[None, :]
        iou = inter / (area_a + area_b - inter)
        match = (pcls[n][:, None] == ccls[n][None, :]) & (pval[n][:, None] > 0.5)
        tm = np.where(match, iou, 0.0).max(axis=0)
        total += float(np.sum(np.where(cval[n] > 0.5, tm, 0.0)))
        count += float(np.sum(cval[n]))
    return 1.0 if count == 0.0 else 1.0 - total / count


def _make_pred(key, n_img, n_pred, nc, size):
    kxy, kwh, ksc = jax.random.split(key, 3)
    cxcy = jax.random.uniform(kxy, (n_img, n_pred, 2), minval=4.0, maxval=size - 4.0)
    wh = jax.random.uniform(kwh, (n_img, n_pred, 2), minval=2.0, maxval=10.0)
    scores = jax.random.uniform(ksc, (n_img, n_pred, 1 + nc), minval=0.0, maxval=1.0)
    return jnp.concatenate([cxcy, wh, scores], axis=-1).astype(jnp.float32)


if __name__ == "__main__":
    n_pred, nc = 64, 3
    img_size = (32, 32)          # (h, w)
    conf_threshold = 0.25
    iou_threshold = 0.45

    key = jax.random.PRNGKey(0)

    for batch in (2, 5):         # exercises >=2 grid steps and batch padding
        kc, kp, key = jax.random.split(key, 3)
        output_clean = _make_pred(kc, batch, n_pred, nc, float(img_size[0]))
        output_patch = _make_pred(kp, batch, n_pred, nc, float(img_size[0]))

        loss = iou_loss(output_clean, output_patch, conf_threshold,
                        iou_threshold, img_size)
        loss = jax.block_until_ready(loss)

        ref = _reference_loss(output_clean, output_patch, conf_threshold, img_size)
        # tolerance accounts for the approximate (EUP) reciprocal in the kernel
        np.testing.assert_allclose(np.asarray(loss), ref, rtol=5e-3, atol=5e-3)

    print("KERNEL_OK")
</pallas_src>

<mosaic_0001>
module attributes {stable_mosaic.version = 11 : i64} {
  func.func @_iou_partial_kernel(%arg0: i32, %arg1: memref<1x64x8xf32, #tpu.memory_space<vmem>>, %arg2: memref<1x8x128xf32, #tpu.memory_space<vmem>>, %arg3: memref<1x1x128xf32, #tpu.memory_space<vmem>>) attributes {dimension_semantics = [#tpu.dimension_semantics<parallel>], iteration_bounds = array<i64: 2>, scalar_prefetch = 0 : i64, scratch_operands = 0 : i64, tpu.core_type = #tpu.core_type<tc>, window_params = [{transform_indices = @transform_0, window_bounds = array<i64: 1, 64, 8>}, {transform_indices = @transform_1, window_bounds = array<i64: 1, 8, 128>}, {transform_indices = @transform_2, window_bounds = array<i64: 1, 1, 128>}]} {
    %c0 = arith.constant 0 : index
    %c0_0 = arith.constant 0 : index
    %c0_1 = arith.constant 0 : index
    %0 = vector.load %arg1[%c0, %c0_0, %c0_1] : memref<1x64x8xf32, #tpu.memory_space<vmem>>, vector<1x64x1xf32>
    %c0_2 = arith.constant 0 : index
    %c0_3 = arith.constant 0 : index
    %c1 = arith.constant 1 : index
    %1 = vector.load %arg1[%c0_2, %c0_3, %c1] : memref<1x64x8xf32, #tpu.memory_space<vmem>>, vector<1x64x1xf32>
    %c0_4 = arith.constant 0 : index
    %c0_5 = arith.constant 0 : index
    %c2 = arith.constant 2 : index
    %2 = vector.load %arg1[%c0_4, %c0_5, %c2] : memref<1x64x8xf32, #tpu.memory_space<vmem>>, vector<1x64x1xf32>
    %c0_6 = arith.constant 0 : index
    %c0_7 = arith.constant 0 : index
    %c3 = arith.constant 3 : index
    %3 = vector.load %arg1[%c0_6, %c0_7, %c3] : memref<1x64x8xf32, #tpu.memory_space<vmem>>, vector<1x64x1xf32>
    %c0_8 = arith.constant 0 : index
    %c0_9 = arith.constant 0 : index
    %c4 = arith.constant 4 : index
    %4 = vector.load %arg1[%c0_8, %c0_9, %c4] : memref<1x64x8xf32, #tpu.memory_space<vmem>>, vector<1x64x1xf32>
    %c0_10 = arith.constant 0 : index
    %c0_11 = arith.constant 0 : index
    %c5 = arith.constant 5 : index
    %5 = vector.load %arg1[%c0_10, %c0_11, %c5] : memref<1x64x8xf32, #tpu.memory_space<vmem>>, vector<1x64x1xf32>
    %c0_12 = arith.constant 0 : index
    %c0_13 = arith.constant 0 : index
    %c0_14 = arith.constant 0 : index
    %6 = vector.load %arg2[%c0_12, %c0_13, %c0_14] : memref<1x8x128xf32, #tpu.memory_space<vmem>>, vector<1x1x128xf32>
    %c0_15 = arith.constant 0 : index
    %c1_16 = arith.constant 1 : index
    %c0_17 = arith.constant 0 : index
    %7 = vector.load %arg2[%c0_15, %c1_16, %c0_17] : memref<1x8x128xf32, #tpu.memory_space<vmem>>, vector<1x1x128xf32>
    %c0_18 = arith.constant 0 : index
    %c2_19 = arith.constant 2 : index
    %c0_20 = arith.constant 0 : index
    %8 = vector.load %arg2[%c0_18, %c2_19, %c0_20] : memref<1x8x128xf32, #tpu.memory_space<vmem>>, vector<1x1x128xf32>
    %c0_21 = arith.constant 0 : index
    %c3_22 = arith.constant 3 : index
    %c0_23 = arith.constant 0 : index
    %9 = vector.load %arg2[%c0_21, %c3_22, %c0_23] : memref<1x8x128xf32, #tpu.memory_space<vmem>>, vector<1x1x128xf32>
    %c0_24 = arith.constant 0 : index
    %c4_25 = arith.constant 4 : index
    %c0_26 = arith.constant 0 : index
    %10 = vector.load %arg2[%c0_24, %c4_25, %c0_26] : memref<1x8x128xf32, #tpu.memory_space<vmem>>, vector<1x1x128xf32>
    %c0_27 = arith.constant 0 : index
    %c5_28 = arith.constant 5 : index
    %c0_29 = arith.constant 0 : index
    %11 = vector.load %arg2[%c0_27, %c5_28, %c0_29] : memref<1x8x128xf32, #tpu.memory_space<vmem>>, vector<1x1x128xf32>
    %c0_30 = arith.constant 0 : index
    %c6 = arith.constant 6 : index
    %c0_31 = arith.constant 0 : index
    %12 = vector.load %arg2[%c0_30, %c6, %c0_31] : memref<1x8x128xf32, #tpu.memory_space<vmem>>, vector<1x1x128xf32>
    %13 = vector.broadcast %2 : vector<1x64x1xf32> to vector<1x64x128xf32>
    %14 = vector.broadcast %8 : vector<1x1x128xf32> to vector<1x64x128xf32>
    %15 = arith.minimumf %13, %14 : vector<1x64x128xf32>
    %16 = vector.broadcast %0 : vector<1x64x1xf32> to vector<1x64x128xf32>
    %17 = vector.broadcast %6 : vector<1x1x128xf32> to vector<1x64x128xf32>
    %18 = arith.maximumf %16, %17 : vector<1x64x128xf32>
    %19 = arith.subf %15, %18 : vector<1x64x128xf32>
    %cst = arith.constant 0.000000e+00 : f32
    %20 = vector.broadcast %cst : f32 to vector<1x64x128xf32>
    %21 = arith.maximumf %19, %20 : vector<1x64x128xf32>
    %22 = vector.broadcast %3 : vector<1x64x1xf32> to vector<1x64x128xf32>
    %23 = vector.broadcast %9 : vector<1x1x128xf32> to vector<1x64x128xf32>
    %24 = arith.minimumf %22, %23 : vector<1x64x128xf32>
    %25 = vector.broadcast %1 : vector<1x64x1xf32> to vector<1x64x128xf32>
    %26 = vector.broadcast %7 : vector<1x1x128xf32> to vector<1x64x128xf32>
    %27 = arith.maximumf %25, %26 : vector<1x64x128xf32>
    %28 = arith.subf %24, %27 : vector<1x64x128xf32>
    %cst_32 = arith.constant 0.000000e+00 : f32
    %29 = vector.broadcast %cst_32 : f32 to vector<1x64x128xf32>
    %30 = arith.maximumf %28, %29 : vector<1x64x128xf32>
    %31 = arith.mulf %21, %30 : vector<1x64x128xf32>
    %32 = vector.broadcast %5 : vector<1x64x1xf32> to vector<1x64x128xf32>
    %33 = vector.broadcast %12 : vector<1x1x128xf32> to vector<1x64x128xf32>
    %34 = arith.addf %32, %33 : vector<1x64x128xf32>
    %35 = arith.subf %34, %31 : vector<1x64x128xf32>
    %cst_33 = arith.constant 9.99999996E-13 : f32
    %36 = vector.broadcast %cst_33 : f32 to vector<1x64x128xf32>
    %37 = arith.maximumf %35, %36 : vector<1x64x128xf32>
    %38 = tpu.reciprocal %37 {approx = true} : vector<1x64x128xf32> -> vector<1x64x128xf32>
    %39 = arith.mulf %31, %38 : vector<1x64x128xf32>
    %40 = vector.broadcast %4 : vector<1x64x1xf32> to vector<1x64x128xf32>
    %41 = vector.broadcast %10 : vector<1x1x128xf32> to vector<1x64x128xf32>
    %42 = arith.cmpf oeq, %40, %41 : vector<1x64x128xf32>
    %cst_34 = arith.constant 0.000000e+00 : f32
    %43 = vector.broadcast %cst_34 : f32 to vector<1x64x128xf32>
    %44 = arith.select %42, %39, %43 : vector<1x64x128xi1>, vector<1x64x128xf32>
    %cst_35 = arith.constant dense<0xFF800000> : vector<1x128xf32>
    %45 = vector.multi_reduction <maximumf>, %44, %cst_35 [1] : vector<1x64x128xf32> to vector<1x128xf32>
    %46 = vector.shape_cast %45 : vector<1x128xf32> to vector<1x1x128xf32>
    %47 = arith.mulf %46, %11 : vector<1x1x128xf32>
    %cst_36 = arith.constant dense<0.000000e+00> : vector<1x128xf32>
    %48 = vector.multi_reduction <add>, %47, %cst_36 [0] : vector<1x1x128xf32> to vector<1x128xf32>
    %49 = vector.shape_cast %48 : vector<1x128xf32> to vector<1x1x128xf32>
    %c0_37 = arith.constant 0 : index
    %c0_38 = arith.constant 0 : index
    %c0_39 = arith.constant 0 : index
    %50 = vector.load %arg3[%c0_37, %c0_38, %c0_39] : memref<1x1x128xf32, #tpu.memory_space<vmem>>, vector<1x1x128xf32>
    tpu.vector_store %arg3[%c0_37, %c0_38, %c0_39], %49 {strides = array<i32>} : memref<1x1x128xf32, #tpu.memory_space<vmem>>, vector<1x1x128xf32>,
    return
  }
  func.func @transform_0(%arg0: i32) -> (i32, i32, i32) {
    %c0_i32 = arith.constant 0 : i32
    %c0_i32_0 = arith.constant 0 : i32
    %c0_i32_1 = arith.constant 0 : i32
    return %arg0, %c0_i32, %c0_i32_0 : i32, i32, i32
  }
  func.func @transform_1(%arg0: i32) -> (i32, i32, i32) {
    %c0_i32 = arith.constant 0 : i32
    %c0_i32_0 = arith.constant 0 : i32
    %c0_i32_1 = arith.constant 0 : i32
    return %arg0, %c0_i32, %c0_i32_0 : i32, i32, i32
  }
  func.func @transform_2(%arg0: i32) -> (i32, i32, i32) {
    %c0_i32 = arith.constant 0 : i32
    %c0_i32_0 = arith.constant 0 : i32
    %c0_i32_1 = arith.constant 0 : i32
    return %arg0, %c0_i32, %c0_i32_0 : i32, i32, i32
  }
}

</mosaic_0001>

<bundles_post_ra>
// kernel: tpu_custom_call.1
= control target key start
LH: loop header
LB: loop body
LE: loop exit
PB: predicated region body
PF: predicated region fallthrough
CT: control target
= control target key end

     0   :  { %7 = vsyncpa [#allocation3], 0  ;;  %s1044_s0 = inlined_call_operand.vmem [shape: f32[2,64,8], index: 0, kind: input, shape index: {}]   ;;  %s1045_s1 = inlined_call_operand.vmem [shape: f32[2,8,128], index: 1, kind: input, shape index: {}]   ;;  %s1046_s2 = inlined_call_operand.hbm [shape: f32[2,1,128], index: 2, kind: output, shape index: {}]  }
   0x1   :  { %9 = vsyncpa [#allocation3 + $0x1], 0  ;;  %s783_s9 = smov 0   ;;  %s785_s10 = smov 0  }
   0x2   :  { %s787_s11 = smov 0   ;;  %s789_s12 = smov 0  }
   0x3 LB: > { %s804_s13 = sadd.s32 4294967295, %s760_s12   ;;  %s603_s14 = sadd.s32 4294967294, %s760_s12   ;;  %s760_s12 = sphi %s789_s12, %s1052_s12   ;;  %s756_s11 = sphi %s787_s11, %s1051_s11   ;;  %s752_s10 = sphi %s785_s10, %s1050_s10   ;;  %s748_s9 = sphi %s783_s9, %s1049_s9  }
   0x4   : > { %s808_s15 = sadd.s32 1, %s760_s12   ;;  %s74_s16 = sadd.s32 1, %s756_s11 }
   0x5   : > { %s71_s17 = ssub.s32 %s760_s12, %s808_s15  ;;  %p84_p0 = scmp.ne.s32.totalorder %s756_s11, %s752_s10 }
   0x6   : > { %p72_p1 = scmp.eq.s32.totalorder %s71_s17, 0  ;;  %p85_p2 = scmp.eq.s32.totalorder %s804_s13, 1 }
   0x7   : > { %p90_p3 = scmp.ne.s32.totalorder %s752_s10, %s748_s9  ;;  %p91_p4 = scmp.eq.s32.totalorder %s603_s14, 1 }
   0x8   : > { %s819_s18 = scalar_select %p72_p1, %s756_s11, %s74_s16  }
   0x9   : > { %p821_p5 = por %p85_p2, %p84_p0  ;;  %p825_p6 = por %p91_p4, %p90_p3 }
   0xa   : > { %p606_p7 = scmp.ge.s32.totalorder %s760_s12, 1  ;;  %p124_p8 = scmp.lt.s32.totalorder %s760_s12, 3 }
   0xc   : > { %p125_p9 = pnand %p606_p7, %p124_p8 }
   0xd   : > { %p149_p10 = scmp.lt.s32.totalorder (!%p125_p9), %s804_s13, 1  ;;  %s147_s30 = sand.u32 (!%p125_p9), 1, %s752_s10  }
   0xe   : > { %128 = sbr.rel (%p125_p9) target bundleno = 305 (0x131), region = 28  ;;  %s532_s5 = scalar_lea.hbm (!%p125_p9), %s1046_s2, %s804_s13 }
   0xf   : > { %s148_s6 = scalar_lea.vmem (!%p125_p9), [#allocation2], %s147_s30  ;;  %s536_s8 = sshll.u32 (!%p125_p9), %s532_s5, 4  ;;  %s537_s8 = int_to_ptr.hbm [resolvable:$true] %s536_s8 }
  0x10   : > { %s534_s7 = sshll.u32 (!%p125_p9), %s148_s6, 4  ;;  %s524_s14 = scalar_lea.sflag (!%p125_p9), [#allocation3], %s147_s30  ;;  %s535_s7 = int_to_ptr.vmem [resolvable:$true] %s534_s7 }
  0x11   : > { %s712_s16 = sshra.s32 (!%p125_p9), %s537_s8, 4  ;;  %s713_s16 = int_to_ptr.hbm [resolvable:$true] %s712_s16 }
  0x12   : > { %s714_s17 = scalar_lea.hbm (!%p125_p9), %s713_s16, 1  ;;  %p719_p0 = scmp.lt.s32.totalorder (!%p125_p9), %s713_s16, %s1046_s2 }
  0x13   : > { %v762_v0 = vmov 2   ;;  %s150_s21 = scalar_select %p149_p10, %s804_s13, 1  ;;  %v763_v9 = vmov 0   ;;  %v764_v10 = vmov 3   ;;  %v765_v11 = vmov 1  }
  0x14   : > { %660 = vset.pattern.permute.xlu2 %v762_v0  ;;  %659 = vset.pattern.permute.xlu1 %v762_v0  ;;  %v766_v12 = vmov 5   ;;  %v767_v14 = vmov 4   ;;  %p715_p11 = scmp.ne.s32.totalorder %s713_s16, %s714_s17 }
  0x15   : > { %658 = vset.pattern.permute.xlu0 %v762_v0  ;;  %s612_s22 = sshll.u32 %s150_s21, 6  ;;  %s609_s23 = sshll.u32 %s150_s21, 3 }
  0x16   : > { %s153_s26 = scalar_lea.vmem %s1044_s0, %s612_s22  ;;  %s847_s29 = scalar_lea.vmem %s1045_s1, %s609_s23 }
  0x17   : > { %v836_v1 = vld [vmem:[%s153_s26 + $0x20] sm:$0xff]  ;;  %v838_v2 = vld [vmem:[%s153_s26 + $0x10] sm:$0xff]  ;;  %v850_v4 = vld [vmem:[%s153_s26 + $0x28] sm:$0xff]  ;;  %p716_p12 = pnand %p715_p11, %p821_p5  ;;  %s718_s22 = scalar_lea.hbm %s1046_s2, 2 }
  0x18   : > { %v840_v3 = vld [vmem:[%s153_s26] sm:$0xff]  ;;  %195 = vperm.xlu2 %660, %v836_v1   ;;  %185 = vperm.xlu1 %659, %v838_v2   ;;  %v852_v5 = vld [vmem:[%s153_s26 + $0x18] sm:$0xff]  ;;  %v159_v6 = vld [vmem:[%s153_s26 + $0x8] sm:$0xff]  ;;  %p720_p1 = scmp.lt.s32.totalorder %s718_s22, %s714_s17 }
  0x19   : > { %175 = vperm.xlu0 %658, %v840_v3   ;;  %v856_v7 = vld [vmem:[%s153_s26 + $0x38] sm:$0xff]  ;;  %v164_v8 = vld [vmem:[%s153_s26 + $0x30] sm:$0xff]  ;;  %v883_v17 = vld [vmem:[%s847_s29] ss:$0 sm:$0xff]  ;;  %p717_p13 = pneg %p716_p12 }
  0x1a   : > { %v886_v18 = vld [vmem:[%s847_s29 + $0x2] ss:$0 sm:$0xff]  ;;  %v920_v49 = vld [vmem:[%s847_s29 + $0x3] ss:$0 sm:$0xff]  ;;  %v923_v51 = vld [vmem:[%s847_s29 + $0x1] ss:$0 sm:$0xff]  ;;  %p721_p2 = por %p720_p1, %p719_p0 }
  0x1c   : > { %p722_p3 = pnand %p721_p2, %p717_p13 }
  0x20   : > { %200 = vperm.xlu2 %660, %v850_v4   ;;  %190 = vperm.xlu1 %659, %v852_v5  }
  0x21   : > { %180 = vperm.xlu0 %658, %v159_v6  }
  0x28   : > { %661 = vset.pattern.permute.xlu2 %v763_v9  ;;  %210 = vperm.xlu1 %659, %v856_v7  }
  0x29   : > { %205 = vperm.xlu0 %658, %v164_v8   ;;  %223 = vperm.xlu2 %661, %v840_v3  }
  0x30   : > { %663 = vset.pattern.permute.xlu1 %v763_v9 }
  0x31   : > { %662 = vset.pattern.permute.xlu0 %v763_v9  ;;  %231 = vperm.xlu1 %663, %v838_v2  }
  0x32   : > { %235 = vperm.xlu2 %661, %v852_v5   ;;  %227 = vperm.xlu0 %662, %v159_v6  }
  0x39   : > { %239 = vperm.xlu1 %663, %v836_v1  }
  0x3a   : > { %243 = vperm.xlu2 %661, %v850_v4   ;;  %247 = vperm.xlu0 %662, %v164_v8  }
  0x41   : > { %251 = vperm.xlu1 %663, %v856_v7  }
  0x42   : > { %664 = vset.pattern.permute.xlu2 %v764_v10  ;;  %665 = vset.pattern.permute.xlu0 %v764_v10 }
  0x43   : > { %280 = vperm.xlu2 %664, %v840_v3   ;;  %284 = vperm.xlu0 %665, %v159_v6  }
  0x49   : > { %666 = vset.pattern.permute.xlu1 %v764_v10 }
  0x4a   : > { %288 = vperm.xlu1 %666, %v838_v2  }
  0x4b   : > { %292 = vperm.xlu2 %664, %v852_v5   ;;  %304 = vperm.xlu0 %665, %v164_v8  }
  0x52   : > { %296 = vperm.xlu1 %666, %v836_v1  }
  0x53   : > { %300 = vperm.xlu2 %664, %v850_v4   ;;  %668 = vset.pattern.permute.xlu0 %v765_v11 }
  0x54   : > { %325 = vperm.xlu0 %668, %v159_v6  }
  0x5a   : > { %308 = vperm.xlu1 %666, %v856_v7  }
  0x5b   : > { %667 = vset.pattern.permute.xlu2 %v765_v11 }
  0x5c   : > { %321 = vperm.xlu2 %667, %v840_v3   ;;  %345 = vperm.xlu0 %668, %v164_v8  }
  0x62   : > { %669 = vset.pattern.permute.xlu1 %v765_v11 }
  0x63   : > { %329 = vperm.xlu1 %669, %v838_v2  }
  0x64   : > { %333 = vperm.xlu2 %667, %v852_v5   ;;  %671 = vset.pattern.permute.xlu0 %v766_v12 }
  0x65   : > { %390 = vperm.xlu0 %671, %v159_v6  }
  0x6b   : > { %337 = vperm.xlu1 %669, %v836_v1  }
  0x6c   : > { %341 = vperm.xlu2 %667, %v850_v4  }
  0x6d   : > { %410 = vperm.xlu0 %671, %v164_v8  }
  0x72   : > { %v196_v13 = vpop.permute.xlu2 %195 }
  0x73   : > { %349 = vperm.xlu1 %669, %v856_v7   ;;  %v218_v44 = vmin.f32 %v196_v13, %v886_v18 }
  0x74   : > { %670 = vset.pattern.permute.xlu2 %v766_v12 }
  0x75   : > { %386 = vperm.xlu2 %670, %v840_v3   ;;  %674 = vset.pattern.permute.xlu0 %v767_v14 }
  0x76   : > { %463 = vperm.xlu0 %674, %v159_v6  }
  0x7a   : > { %v201_v15 = vpop.permute.xlu2 %200 }
  0x7b   : > { %672 = vset.pattern.permute.xlu1 %v766_v12  ;;  %v219_v27 = vmin.f32 %v201_v15, %v886_v18 }
  0x7c   : > { %394 = vperm.xlu1 %672, %v838_v2  }
  0x7d   : > { %398 = vperm.xlu2 %670, %v852_v5  }
  0x7e   : > { %483 = vperm.xlu0 %674, %v164_v8  }
  0x83   : > { %v224_v16 = vpop.permute.xlu2 %223 }
  0x84   : > { %402 = vperm.xlu1 %672, %v836_v1   ;;  %v255_v19 = vmax.f32 %v224_v16, %v883_v17 }
  0x85   : > { %406 = vperm.xlu2 %670, %v850_v4  }
  0x8a   : > { %v186_v20 = vpop.permute.xlu1 %185 }
  0x8b   : > { %v176_v21 = vpop.permute.xlu0 %175  ;;  %v216_v38 = vmin.f32 %v186_v20, %v886_v18 }
  0x8c   : > { %v236_v22 = vpop.permute.xlu2 %235  ;;  %414 = vperm.xlu1 %672, %v856_v7   ;;  %v214_v23 = vmin.f32 %v176_v21, %v886_v18 }
  0x8d   : > { %673 = vset.pattern.permute.xlu2 %v767_v14  ;;  %v258_v25 = vmax.f32 %v236_v22, %v883_v17 }
  0x8e   : > { %459 = vperm.xlu2 %673, %v840_v3   ;;  %v263_v24 = vsub.f32 %v214_v23, %v255_v19 }
  0x90   : > { %v271_v60 = vmax.f32 %v263_v24, 0.0 }
  0x92   : > { %v191_v26 = vpop.permute.xlu1 %190 }
  0x93   : > { %v217_v28 = vmin.f32 %v191_v26, %v886_v18  ;;  %v895_v29 = vpop.permute.xlu0 %180 }
  0x94   : > { %v244_v30 = vpop.permute.xlu2 %243  ;;  %675 = vset.pattern.permute.xlu1 %v767_v14  ;;  %v215_v16 = vmin.f32 %v895_v29, %v886_v18 }
  0x95   : > { %v897_v31 = vsub.f32 %v217_v28, %v258_v25  ;;  %v260_v32 = vmax.f32 %v244_v30, %v883_v17  ;;  %467 = vperm.xlu1 %675, %v838_v2  }
  0x96   : > { %471 = vperm.xlu2 %673, %v852_v5  }
  0x97   : > { %v902_v33 = vsub.f32 %v219_v27, %v260_v32 }
  0x9a   : > { %v211_v34 = vpop.permute.xlu1 %210 }
  0x9b   : > { %v904_v35 = vpop.permute.xlu0 %205  ;;  %v221_v52 = vmin.f32 %v211_v34, %v886_v18  ;;  %v957_v34 = vld [vmem:[%s847_s29 + $0x6] ss:$0 sm:$0xff] }
  0x9d   : > { %475 = vperm.xlu1 %675, %v836_v1   ;;  %v281_v36 = vpop.permute.xlu2 %280 }
  0x9e   : > { %479 = vperm.xlu2 %673, %v850_v4   ;;  %v312_v54 = vmin.f32 %v281_v36, %v920_v49 }
  0xa3   : > { %v232_v37 = vpop.permute.xlu1 %231 }
  0xa4   : > { %v257_v39 = vmax.f32 %v232_v37, %v883_v17  ;;  %v228_v40 = vpop.permute.xlu0 %227 }
  0xa5   : > { %487 = vperm.xlu1 %675, %v856_v7   ;;  %v911_v41 = vpop.permute.xlu2 %292  ;;  %v256_v20 = vmax.f32 %v228_v40, %v883_v17 }
  0xa6   : > { %v265_v42 = vsub.f32 %v216_v38, %v257_v39  ;;  %v276_v38 = vmax.f32 %v902_v33, 0.0 }
  0xa7   : > { %v264_v27 = vsub.f32 %v215_v16, %v256_v20 }
  0xa8   : > { %v273_v19 = vmax.f32 %v265_v42, 0.0 }
  0xa9   : > { %v272_v37 = vmax.f32 %v264_v27, 0.0 }
  0xab   : > { %v240_v43 = vpop.permute.xlu1 %239 }
  0xac   : > { %v259_v45 = vmax.f32 %v240_v43, %v883_v17  ;;  %v915_v47 = vpop.permute.xlu0 %247 }
  0xad   : > { %v301_v46 = vpop.permute.xlu2 %300 }
  0xae   : > { %v917_v48 = vsub.f32 %v218_v44, %v259_v45  ;;  %v317_v22 = vmin.f32 %v301_v46, %v920_v49 }
  0xb3   : > { %v252_v50 = vpop.permute.xlu1 %251 }
  0xb4   : > { %v262_v53 = vmax.f32 %v252_v50, %v883_v17 }
  0xb5   : > { %v285_v58 = vpop.permute.xlu0 %284 }
  0xb6   : > { %v928_v55 = vsub.f32 %v221_v52, %v262_v53  ;;  %v322_v56 = vpop.permute.xlu2 %321  ;;  %v313_v12 = vmin.f32 %v285_v58, %v920_v49  ;;  %v969_v58 = vld [vmem:[%s847_s29 + $0x4] ss:$0 sm:$0xff] }
  0xb7   : > { %v353_v57 = vmax.f32 %v322_v56, %v923_v51 }
  0xb9   : > { %v361_v59 = vsub.f32 %v312_v54, %v353_v57 }
  0xbb   : > { %v369_v61 = vmax.f32 %v361_v59, 0.0 }
  0xbc   : > { %v289_v62 = vpop.permute.xlu1 %288 }
  0xbd   : > { %v931_v63 = vmul.f32 %v369_v61, %v271_v60  ;;  %v935_v1 = vpop.permute.xlu0 %304  ;;  %v314_v9 = vmin.f32 %v289_v62, %v920_v49 }
  0xbe   : > { %v933_v0 = vpop.permute.xlu2 %333 }
  0xc4   : > { %v297_v2 = vpop.permute.xlu1 %296 }
  0xc5   : > { %v316_v33 = vmin.f32 %v297_v2, %v920_v49  ;;  %v318_v2 = vmin.f32 %v935_v1, %v920_v49 }
  0xc6   : > { %v342_v3 = vpop.permute.xlu2 %341  ;;  %v326_v4 = vpop.permute.xlu0 %325 }
  0xc7   : > { %v354_v13 = vmax.f32 %v326_v4, %v923_v51  ;;  %v358_v15 = vmax.f32 %v342_v3, %v923_v51  ;;  %v315_v3 = vmin.f32 %v911_v41, %v920_v49  ;;  %v356_v4 = vmax.f32 %v933_v0, %v923_v51 }
  0xc9   : > { %v362_v23 = vsub.f32 %v313_v12, %v354_v13  ;;  %v366_v25 = vsub.f32 %v317_v22, %v358_v15 }
  0xcb   : > { %v370_v32 = vmax.f32 %v362_v23, 0.0  ;;  %v374_v36 = vmax.f32 %v366_v25, 0.0 }
  0xcc   : > { %v937_v5 = vpop.permute.xlu1 %308 }
  0xcd   : > { %v378_v40 = vmul.f32 %v370_v32, %v272_v37  ;;  %v382_v42 = vmul.f32 %v374_v36, %v276_v38 }
  0xce   : > { %v941_v7 = vpop.permute.xlu0 %345 }
  0xcf   : > { %v939_v6 = vpop.permute.xlu2 %386  ;;  %v359_v12 = vmax.f32 %v941_v7, %v923_v51 }
  0xd5   : > { %v330_v8 = vpop.permute.xlu1 %329 }
  0xd6   : > { %v355_v10 = vmax.f32 %v330_v8, %v923_v51  ;;  %v220_v8 = vmin.f32 %v904_v35, %v886_v18  ;;  %v275_v18 = vmax.f32 %v917_v48, 0.0  ;;  %v364_v35 = vsub.f32 %v315_v3, %v356_v4 }
  0xd7   : > { %v945_v11 = vpop.permute.xlu2 %398  ;;  %v391_v28 = vpop.permute.xlu0 %390 }
  0xd8   : > { %v363_v14 = vsub.f32 %v314_v9, %v355_v10  ;;  %v419_v29 = vadd.f32 %v957_v34, %v391_v28  ;;  %v261_v10 = vmax.f32 %v915_v47, %v883_v17  ;;  %v418_v17 = vadd.f32 %v957_v34, %v939_v6 }
  0xd9   : > { %v319_v47 = vmin.f32 %v937_v5, %v920_v49  ;;  %v372_v23 = vmax.f32 %v364_v35, 0.0  ;;  %v274_v6 = vmax.f32 %v897_v31, 0.0  ;;  %v421_v49 = vadd.f32 %v957_v34, %v945_v11 }
  0xda   : > { %v371_v21 = vmax.f32 %v363_v14, 0.0  ;;  %v427_v44 = vsub.f32 %v419_v29, %v378_v40  ;;  %v269_v22 = vsub.f32 %v220_v8, %v261_v10  ;;  %v426_v48 = vsub.f32 %v418_v17, %v931_v63 }
  0xdb   : > { %v380_v36 = vmul.f32 %v372_v23, %v274_v6  ;;  %v278_v29 = vmax.f32 %v928_v55, 0.0 }
  0xdc   : > { %v954_v24 = vmul.f32 %v371_v21, %v273_v19  ;;  %v435_v50 = vmax.f32 %v427_v44, 1e-12  ;;  %v367_v19 = vsub.f32 %v318_v2, %v359_v12  ;;  %v434_v32 = vmax.f32 %v426_v48, 1e-12 }
  0xdd   : > { %v338_v26 = vpop.permute.xlu1 %337 }
  0xde   : > { %682 = vrcp.f32 %v435_v50  ;;  %v357_v56 = vmax.f32 %v338_v26, %v923_v51  ;;  %v375_v27 = vmax.f32 %v367_v19, 0.0 }
  0xdf   : > { %v407_v30 = vpop.permute.xlu2 %406  ;;  %v411_v52 = vpop.permute.xlu0 %410 }
  0xe0   : > { %v423_v39 = vadd.f32 %v957_v34, %v407_v30  ;;  %v365_v60 = vsub.f32 %v316_v33, %v357_v56  ;;  %v277_v30 = vmax.f32 %v269_v22, 0.0  ;;  %v424_v37 = vadd.f32 %v957_v34, %v411_v52 }
  0xe2   : > { %v431_v45 = vsub.f32 %v423_v39, %v382_v42  ;;  %v373_v13 = vmax.f32 %v365_v60, 0.0 }
  0xe4   : > { %v439_v53 = vmax.f32 %v431_v45, 1e-12  ;;  %v683_v59 = vpop.eup %682  ;;  %v381_v21 = vmul.f32 %v373_v13, %v275_v18 }
  0xe5   : > { %v350_v43 = vpop.permute.xlu1 %349  ;;  %v451_v14 = vmul.f32 %v683_v59, %v378_v40  ;;  %v429_v40 = vsub.f32 %v421_v49, %v380_v36 }
  0xe6   : > { %684 = vrcp.f32 %v439_v53  ;;  %v360_v41 = vmax.f32 %v350_v43, %v923_v51 }
  0xe7   : > { %686 = vrcp.f32 %v434_v32  ;;  %v437_v45 = vmax.f32 %v429_v40, 1e-12 }
  0xe8   : > { %v962_v46 = vpop.permute.xlu2 %459  ;;  %v464_v61 = vpop.permute.xlu0 %463  ;;  %v368_v20 = vsub.f32 %v319_v47, %v360_v41 }
  0xe9   : > { %vm492_vm0 = vcmp.eq.f32.partialorder %v464_v61, %v969_v58  ;;  %vm491_vm2 = vcmp.eq.f32.partialorder %v962_v46, %v969_v58 }
  0xea   : > { %v500_v1 = vsel %vm492_vm0, %v451_v14, 0.0  ;;  %v376_v5 = vmax.f32 %v368_v20, 0.0 }
  0xec   : > { %v685_v62 = vpop.eup %684  ;;  %v384_v43 = vmul.f32 %v376_v5, %v278_v29 }
  0xed   : > { %v455_v0 = vmul.f32 %v685_v62, %v382_v42  ;;  %v383_v42 = vmul.f32 %v375_v27, %v277_v30  ;;  %v687_v52 = vpop.eup %686 }
  0xee   : > { %v395_v54 = vpop.permute.xlu1 %394 }
  0xef   : > { %v420_v28 = vadd.f32 %v957_v34, %v395_v54  ;;  %v432_v11 = vsub.f32 %v424_v37, %v383_v42 }
  0xf0   : > { %v965_v57 = vpop.permute.xlu2 %471 }
  0xf1   : > { %v428_v31 = vsub.f32 %v420_v28, %v954_v24  ;;  %v440_v54 = vmax.f32 %v432_v11, 1e-12  ;;  %vm494_vm5 = vcmp.eq.f32.partialorder %v965_v57, %v969_v58 }
  0xf3   : > { %v436_v53 = vmax.f32 %v428_v31, 1e-12 }
  0xf6   : > { %v403_v9 = vpop.permute.xlu1 %402 }
  0xf7   : > { %v422_v7 = vadd.f32 %v957_v34, %v403_v9  ;;  %v484_v9 = vpop.permute.xlu0 %483 }
  0xf8   : > { %v480_v15 = vpop.permute.xlu2 %479  ;;  %vm497_vm6 = vcmp.eq.f32.partialorder %v484_v9, %v969_v58 }
  0xf9   : > { %vm496_vm1 = vcmp.eq.f32.partialorder %v480_v15, %v969_v58  ;;  %v430_v25 = vsub.f32 %v422_v7, %v381_v21 }
  0xfa   : > { %v504_v16 = vsel %vm496_vm1, %v455_v0, 0.0 }
  0xfb   : > { %v508_v51 = vmax.f32 %v500_v1, %v504_v16  ;;  %v438_v38 = vmax.f32 %v430_v25, 1e-12 }
  0xfd   : > { %688 = vrcp.f32 %v438_v38 }
  0xfe   : > { %v415_v26 = vpop.permute.xlu1 %414  ;;  %690 = vrcp.f32 %v437_v45 }
  0xff   : > { %v425_v39 = vadd.f32 %v957_v34, %v415_v26  ;;  %692 = vrcp.f32 %v436_v53  ;;  %v450_v34 = vmul.f32 %v687_v52, %v931_v63 }
 0x100   : > { %694 = vrcp.f32 %v440_v54 }
 0x101   : > { %v433_v44 = vsub.f32 %v425_v39, %v384_v43  ;;  %v499_v61 = vsel %vm491_vm2, %v450_v34, 0.0 }
 0x103   : > { %v441_v56 = vmax.f32 %v433_v44, 1e-12  ;;  %v689_v55 = vpop.eup %688 }
 0x104   : > { %v454_v33 = vmul.f32 %v689_v55, %v381_v21  ;;  %v691_v60 = vpop.eup %690 }
 0x105   : > { %696 = vrcp.f32 %v441_v56  ;;  %v693_v3 = vpop.eup %692  ;;  %v453_v63 = vmul.f32 %v691_v60, %v380_v36 }
 0x106   : > { %v695_v8 = vpop.eup %694  ;;  %v452_v46 = vmul.f32 %v693_v3, %v954_v24 }
 0x107   : > { %v468_v50 = vpop.permute.xlu1 %467  ;;  %v456_v12 = vmul.f32 %v695_v8, %v383_v42  ;;  %v502_v0 = vsel %vm494_vm5, %v453_v63, 0.0 }
 0x108   : > { %vm493_vm4 = vcmp.eq.f32.partialorder %v468_v50, %v969_v58 }
 0x109   : > { %v501_v13 = vsel %vm493_vm4, %v452_v46, 0.0  ;;  %v505_v15 = vsel %vm497_vm6, %v456_v12, 0.0 }
 0x10a   : > { %v509_v35 = vmax.f32 %v501_v13, %v505_v15 }
 0x10b   : > { %v697_v10 = vpop.eup %696 }
 0x10c   : > { %v457_v41 = vmul.f32 %v697_v10, %v384_v43 }
 0x10f   : > { %v476_v59 = vpop.permute.xlu1 %475 }
 0x110   : > { %vm495_vm3 = vcmp.eq.f32.partialorder %v476_v59, %v969_v58 }
 0x111   : > { %v503_v62 = vsel %vm495_vm3, %v454_v33, 0.0 }
 0x112   : > { %v507_v4 = vmax.f32 %v499_v61, %v503_v62 }
 0x114   : > { %v511_v2 = vmax.f32 %v507_v4, %v508_v51  ;;  %v171_v51 = vld [vmem:[%s847_s29 + $0x5] sm:$0x1] }
 0x117   : > { %v488_v14 = vpop.permute.xlu1 %487 }
 0x118   : > { %vm498_vm7 = vcmp.eq.f32.partialorder %v488_v14, %v969_v58 }
 0x119   : > { %v506_v18 = vsel %vm498_vm7, %v457_v41, 0.0 }
 0x11a   : > { %v510_v24 = vmax.f32 %v502_v0, %v506_v18 }
 0x11c   : > { %v512_v17 = vmax.f32 %v509_v35, %v510_v24 }
 0x11e   : > { %v513_v47 = vmax.f32 %v511_v2, %v512_v17 }
 0x120   : > { %v514_v57 = vrot.slane %v513_v47, 4 }
 0x122   : > { %v515_v1 = vmax.f32 %v513_v47, %v514_v57 }
 0x124   : > { %v516_v7 = vrot.slane %v515_v1, 2 }
 0x126   : > { %v517_v16 = vmax.f32 %v515_v1, %v516_v7 }
 0x128   : > { %v518_v19 = vrot.slane %v517_v16, 1 }
 0x12a   : > { %v519_v58 = vmax.f32 %v517_v16, %v518_v19 }
 0x12c   : > { %v520_v20 = vmul.f32 %v519_v58, %v171_v51 }
 0x12e   : > { %522 = vst [vmem:[%s148_s6] sm:$0x1] %v520_v20 }
 0x12f   : > { %725 = shalt.err (!%p722_p3)
}
 0x130   : > { %613 = dma.vmem_to_hbm [thread:$0]  (%p821_p5), %s535_s7, 16, %s537_s8, %s524_s14  }
 0x131 PF: > { %p619_p4 = scmp.ge.s32.totalorder %s760_s12, 2  ;;  %s548_s25 = sand.u32 1, %s748_s9  }
 0x132   : > { %s549_s26 = scalar_lea.sflag [#allocation3], %s548_s25 }
 0x133   : > { %p616_p7 = pnand %p619_p4, %p825_p6 }
 0x135   : > { %p617_p8 = pneg %p616_p7 }
 0x137   : > { %743 = dma.done.wait (%p617_p8), %s549_s26, 16  }
 0x138   : > { %745 = vsyncadd (%p617_p8), %s549_s26, 4294967280  ;;  %p12_p9 = scmp.ge.s32.totalorder %s808_s15, 4   ;;  %s1049_s9 = smov %s752_s10 }
 0x139   : > { %s1050_s10 = smov %s756_s11  ;;  %s1051_s11 = smov %s819_s18 }
 0x13a   : > { %s1052_s12 = smov %s808_s15  ;;  %14 = sbr.rel (!%p12_p9) target bundleno = 3 (0x3), region = 66 }
 0x13f   :  { %554 = vsyncpa [#allocation3], 1 }
 0x140   :  { %556 = vsyncpa [#allocation3 + $0x1], 1 }

</bundles_post_ra>
